<compile_context>
chip_gen: v7x
topology: tpu7x:2x2x1
jax: 0.10.0
libtpu: 0.0.40
codegen_flags: <defaults>
</compile_context>

<pallas_src>
import functools

import jax
import jax.numpy as jnp
from jax.experimental import pallas as pl
from jax.experimental.pallas import tpu as pltpu


def _round_up(n, m):
    return ((n + m - 1) // m) * m


def _cdiv(a, b):
    return (a + b - 1) // b


def _emd_kernel(tri_ref, x_ref, y_ref, out_ref, *,
                b_true, c_true, c_pad, tb, dist_r, use_l1loss):
    """One batch tile -> partial EMD sum (lane 0) and partial L1 sum (lane 1)."""
    x = x_ref[...].astype(jnp.float32)            # (tb, C), upcast in-kernel
    y = y_ref[...].astype(jnp.float32)            # (tb, C)
    inv_c = jnp.float32(1.0 / c_true)

    # Mask rows beyond the true batch: the last partial tile reads
    # out-of-bounds garbage rows (Pallas does not zero-fill block reads).
    row = jax.lax.broadcasted_iota(jnp.int32, (x.shape[0], 1), 0)
    valid = (pl.program_id(0) * tb + row) < b_true           # (tb, 1)
    diff = jnp.where(valid, y - x, jnp.float32(0.0))          # (tb, C)

    # Single MXU matmul:
    #   columns [0, C_pad)      -> cumsum(y - x) along C (lane-dense)
    #   lane C_pad (extra block) -> sum_c((y - x) * rate_scale)   (L1 fusion)
    prod = jnp.dot(diff, tri_ref[...], preferred_element_type=jnp.float32)

    cdf_diff = prod[:, :c_pad]                                # (tb, C_pad)
    if dist_r == 2:
        samplewise = jnp.sqrt(
            jnp.sum(cdf_diff * cdf_diff, axis=-1, keepdims=True) * inv_c)
    else:
        samplewise = jnp.sum(jnp.abs(cdf_diff), axis=-1, keepdims=True) * inv_c
    emd_sum = jnp.sum(samplewise)

    if use_l1loss:
        # Only lane 0 of the extra 128-lane block is nonzero, so the block
        # sum of |.| is exactly |sum_c((y-x)*rate_scale)| per row.
        l1_sum = jnp.sum(jnp.abs(prod[:, c_pad:])) * inv_c
    else:
        l1_sum = jnp.float32(0.0)

    # Lane-dense (1, 8, 128) writeback: lane 0 = emd_sum, lane 1 = l1_sum
    # (only [0,0,0] and [0,0,1] are read by the wrapper).
    lane = jax.lax.broadcasted_iota(jnp.int32, out_ref.shape, out_ref.ndim - 1)
    out_ref[...] = jnp.where(lane == 0, emd_sum, l1_sum)


def emd_loss_pallas(x, y_true, *, dist_r=2, use_l1loss=True, l1loss_coef=0.0):
    """Pallas equivalent of emd_loss.forward(x, y_true). Returns a scalar."""
    assert x.ndim == 2 and y_true.ndim == 2
    assert x.shape[0] == y_true.shape[0] and x.shape[0] > 0
    assert x.shape[1] == y_true.shape[1]
    B, C = x.shape
    f32 = jnp.float32

    C_pad = _round_up(C, 128)               # lane-dense matmul output width
    n_extra = 128 if use_l1loss else 0      # extra RHS block carrying rate_scale

    # Batch tile: big enough to amortize per-grid-step overhead, small enough
    # for VMEM headroom (v7x: 64 MiB physical / 32 MiB scoped default), and
    # chosen so num_tiles >= 2 whenever B allows (v7x has 2 TensorCores).
    itemsize = max(jnp.dtype(x.dtype).itemsize, jnp.dtype(y_true.dtype).itemsize)
    max_rows = max(8, (((4 << 20) // (C_pad * itemsize)) // 8) * 8)
    if B <= 8:
        tb = B                               # full-dim block (no 8-row rounding needed)
    else:
        half = _round_up(_cdiv(B, 2), 8)     # >= 2 grid steps when B is large enough
        tb = max(8, min(2048, max_rows, half))
    num_tiles = _cdiv(B, tb)

    # Cumsum-as-matmul RHS, built once, resident across grid steps:
    #   tri[k, j]      = 1  for k <= j < C        (cumulative sum)
    #   tri[k, C_pad]  = k + 1                    (rate_scale column, L1 fusion)
    #   all other (padded) columns are zero.
    row = jax.lax.broadcasted_iota(jnp.int32, (C, C_pad + n_extra), 0)
    col = jax.lax.broadcasted_iota(jnp.int32, (C, C_pad + n_extra), 1)
    tri = ((row <= col) & (col < C)).astype(f32)
    if use_l1loss:
        tri = tri + jnp.where(col == C_pad, (row + 1).astype(f32), f32(0.0))

    kernel = functools.partial(
        _emd_kernel, b_true=B, c_true=C, c_pad=C_pad, tb=tb,
        dist_r=dist_r, use_l1loss=use_l1loss)

    # VMEM budget: resident RHS (double-buffered by default) + 2x double-
    # buffered input tiles + output blocks, with slack; never below default.
    tri_vmem = 2 * _round_up(C, 8) * (C_pad + n_extra) * 4
    in_vmem = 2 * 2 * tb * C_pad * itemsize
    vmem_limit = int(min(max(32 << 20, tri_vmem + in_vmem + (4 << 20)), 64 << 20))

    partials = pl.pallas_call(
        kernel,
        out_shape=jax.ShapeDtypeStruct((num_tiles, 8, 128), f32),
        grid=(num_tiles,),
        in_specs=[
            # Constant index_map -> DMA'd once, stays resident across steps.
            pl.BlockSpec((C, C_pad + n_extra), lambda i: (0, 0)),
            # Native-shape, native-dtype batch tiles (no wrapper pad / cast).
            pl.BlockSpec((tb, C), lambda i: (i, 0)),
            pl.BlockSpec((tb, C), lambda i: (i, 0)),
        ],
        out_specs=pl.BlockSpec((1, 8, 128), lambda i: (i, 0, 0)),
        compiler_params=pltpu.CompilerParams(
            dimension_semantics=("parallel",),
            vmem_limit_bytes=vmem_limit),
    )(tri, x, y_true)

    # Finish the batch mean outside the kernel (divide by the true B).
    loss = jnp.sum(partials[:, 0, 0]) / B
    if use_l1loss:
        loss = loss + (jnp.sum(partials[:, 0, 1]) / B) * f32(l1loss_coef)
    return loss


def emd_loss_ref(x, y_true, *, dist_r=2, use_l1loss=True, l1loss_coef=0.0):
    """Pure-JAX reference matching the PyTorch module."""
    x = x.astype(jnp.float32)
    y_true = y_true.astype(jnp.float32)
    cdf_x = jnp.cumsum(x, axis=-1)
    cdf_y = jnp.cumsum(y_true, axis=-1)
    if dist_r == 2:
        samplewise = jnp.sqrt(jnp.mean((cdf_y - cdf_x) ** 2, axis=-1))
    else:
        samplewise = jnp.mean(jnp.abs(cdf_y - cdf_x), axis=-1)
    loss = jnp.mean(samplewise)
    if use_l1loss:
        rate_scale = jnp.arange(1, x.shape[1] + 1, dtype=jnp.float32)
        x_mean = jnp.mean(x * rate_scale, axis=-1)
        y_mean = jnp.mean(y_true * rate_scale, axis=-1)
        loss = loss + jnp.mean(jnp.abs(x_mean - y_mean)) * l1loss_coef
    return loss


if __name__ == "__main__":
    key = jax.random.PRNGKey(0)

    # --- Case 1: module-typical small shapes (B=8 samples, C=16 bins). ---
    kx, ky = jax.random.split(key)
    B, C = 8, 16
    x = jax.nn.softmax(jax.random.normal(kx, (B, C), dtype=jnp.float32), axis=-1)
    y = jax.nn.softmax(jax.random.normal(ky, (B, C), dtype=jnp.float32), axis=-1)

    for dist_r, coef in ((2, 0.0), (2, 0.5), (1, 0.25)):
        out = jax.block_until_ready(
            emd_loss_pallas(x, y, dist_r=dist_r, use_l1loss=True, l1loss_coef=coef))
        ref = emd_loss_ref(x, y, dist_r=dist_r, use_l1loss=True, l1loss_coef=coef)
        assert jnp.allclose(out, ref, atol=1e-5, rtol=1e-5), (dist_r, coef, out, ref)

    # --- Case 2: native bf16 inputs (no wrapper-side cast; upcast in-kernel). ---
    x_bf = x.astype(jnp.bfloat16)
    y_bf = y.astype(jnp.bfloat16)
    out_bf = jax.block_until_ready(
        emd_loss_pallas(x_bf, y_bf, dist_r=2, use_l1loss=True, l1loss_coef=0.5))
    ref_bf = emd_loss_ref(x_bf, y_bf, dist_r=2, use_l1loss=True, l1loss_coef=0.5)
    assert jnp.allclose(out_bf, ref_bf, atol=1e-5, rtol=1e-5), (out_bf, ref_bf)

    # --- Case 3: larger batch -> 2 grid steps + masked partial last tile. ---
    kx2, ky2 = jax.random.split(ky)
    B2, C2 = 600, 10
    x2 = jax.nn.softmax(jax.random.normal(kx2, (B2, C2), dtype=jnp.float32), axis=-1)
    y2 = jax.nn.softmax(jax.random.normal(ky2, (B2, C2), dtype=jnp.float32), axis=-1)
    out2 = jax.block_until_ready(
        emd_loss_pallas(x2, y2, dist_r=2, use_l1loss=True, l1loss_coef=0.3))
    ref2 = emd_loss_ref(x2, y2, dist_r=2, use_l1loss=True, l1loss_coef=0.3)
    assert jnp.allclose(out2, ref2, atol=1e-5, rtol=1e-5), (out2, ref2)

    print("KERNEL_OK")
</pallas_src>

<mosaic_0001>
module attributes {stable_mosaic.version = 11 : i64} {
  func.func @_emd_kernel(%arg0: i32, %arg1: memref<16x256xf32, #tpu.memory_space<vmem>>, %arg2: memref<8x16xf32, #tpu.memory_space<vmem>>, %arg3: memref<8x16xf32, #tpu.memory_space<vmem>>, %arg4: memref<1x8x128xf32, #tpu.memory_space<vmem>>) attributes {dimension_semantics = [#tpu.dimension_semantics<parallel>], iteration_bounds = array<i64: 1>, scalar_prefetch = 0 : i64, scratch_operands = 0 : i64, tpu.core_type = #tpu.core_type<tc>, window_params = [{pipeline_mode = #tpu.pipeline_mode<synchronous>, transform_indices = @transform_0, window_bounds = array<i64: 16, 256>}, {transform_indices = @transform_1, window_bounds = array<i64: 8, 16>}, {transform_indices = @transform_2, window_bounds = array<i64: 8, 16>}, {transform_indices = @transform_3, window_bounds = array<i64: 1, 8, 128>}]} {
    %c0 = arith.constant 0 : index
    %c0_0 = arith.constant 0 : index
    %0 = vector.load %arg2[%c0, %c0_0] : memref<8x16xf32, #tpu.memory_space<vmem>>, vector<8x16xf32>
    %c0_1 = arith.constant 0 : index
    %c0_2 = arith.constant 0 : index
    %1 = vector.load %arg3[%c0_1, %c0_2] : memref<8x16xf32, #tpu.memory_space<vmem>>, vector<8x16xf32>
    %2 = tpu.iota {dimensions = array<i32: 0>} : vector<8x1xi32>
    %c8_i32 = arith.constant 8 : i32
    %3 = arith.muli %arg0, %c8_i32 : i32
    %4 = vector.broadcast %3 : i32 to vector<8x1xi32>
    %5 = arith.addi %4, %2 : vector<8x1xi32>
    %c8_i32_3 = arith.constant 8 : i32
    %6 = vector.broadcast %c8_i32_3 : i32 to vector<8x1xi32>
    %7 = arith.cmpi slt, %5, %6 : vector<8x1xi32>
    %8 = arith.subf %1, %0 : vector<8x16xf32>
    %cst = arith.constant 0.000000e+00 : f32
    %9 = vector.shape_cast %7 : vector<8x1xi1> to vector<8x1xi1>
    %10 = vector.broadcast %9 : vector<8x1xi1> to vector<8x16xi1>
    %11 = vector.broadcast %cst : f32 to vector<8x16xf32>
    %12 = arith.select %10, %8, %11 : vector<8x16xi1>, vector<8x16xf32>
    %c0_4 = arith.constant 0 : index
    %c0_5 = arith.constant 0 : index
    %13 = vector.load %arg1[%c0_4, %c0_5] : memref<16x256xf32, #tpu.memory_space<vmem>>, vector<16x256xf32>
    %cst_6 = arith.constant dense<0.000000e+00> : vector<8x256xf32>
    %14 = tpu.matmul %12, %13, %cst_6 {dimension_numbers = #tpu.dot_dimension_numbers<[1], [0], [0], [1], [0, 0, 1, 1], [], []>} : vector<8x16xf32>, vector<16x256xf32>, vector<8x256xf32> -> vector<8x256xf32>
    %15 = vector.extract_strided_slice %14 {offsets = [0, 0], sizes = [8, 128], strides = [1, 1]} : vector<8x256xf32> to vector<8x128xf32>
    %16 = arith.mulf %15, %15 : vector<8x128xf32>
    %cst_7 = arith.constant dense<0.000000e+00> : vector<8xf32>
    %17 = vector.multi_reduction <add>, %16, %cst_7 [1] : vector<8x128xf32> to vector<8xf32>
    %18 = vector.shape_cast %17 : vector<8xf32> to vector<8x1xf32>
    %cst_8 = arith.constant 6.250000e-02 : f32
    %19 = vector.broadcast %cst_8 : f32 to vector<8x1xf32>
    %20 = arith.mulf %18, %19 : vector<8x1xf32>
    %21 = math.sqrt %20 : vector<8x1xf32>
    %22 = vector.shape_cast %21 : vector<8x1xf32> to vector<1x8x1xf32>
    %cst_9 = arith.constant dense<0.000000e+00> : vector<1xf32>
    %23 = vector.multi_reduction <add>, %22, %cst_9 [1, 2] : vector<1x8x1xf32> to vector<1xf32>
    %24 = vector.shape_cast %23 : vector<1xf32> to vector<1x1x1xf32>
    %25 = vector.extract %24[0, 0, 0] : f32 from vector<1x1x1xf32>
    %26 = vector.extract_strided_slice %14 {offsets = [0, 128], sizes = [8, 128], strides = [1, 1]} : vector<8x256xf32> to vector<8x128xf32>
    %27 = math.absf %26 : vector<8x128xf32>
    %28 = vector.shape_cast %27 : vector<8x128xf32> to vector<1x8x128xf32>
    %cst_10 = arith.constant dense<0.000000e+00> : vector<1xf32>
    %29 = vector.multi_reduction <add>, %28, %cst_10 [1, 2] : vector<1x8x128xf32> to vector<1xf32>
    %30 = vector.shape_cast %29 : vector<1xf32> to vector<1x1x1xf32>
    %31 = vector.extract %30[0, 0, 0] : f32 from vector<1x1x1xf32>
    %cst_11 = arith.constant 6.250000e-02 : f32
    %32 = arith.mulf %31, %cst_11 : f32
    %33 = tpu.iota {dimensions = array<i32: 2>} : vector<1x8x128xi32>
    %c0_i32 = arith.constant 0 : i32
    %34 = vector.broadcast %c0_i32 : i32 to vector<1x8x128xi32>
    %35 = arith.cmpi eq, %33, %34 : vector<1x8x128xi32>
    %36 = vector.broadcast %25 : f32 to vector<1x8x128xf32>
    %37 = vector.broadcast %32 : f32 to vector<1x8x128xf32>
    %38 = arith.select %35, %36, %37 : vector<1x8x128xi1>, vector<1x8x128xf32>
    %c0_12 = arith.constant 0 : index
    %c0_13 = arith.constant 0 : index
    %c0_14 = arith.constant 0 : index
    %39 = vector.load %arg4[%c0_12, %c0_13, %c0_14] : memref<1x8x128xf32, #tpu.memory_space<vmem>>, vector<1x8x128xf32>
    tpu.vector_store %arg4[%c0_12, %c0_13, %c0_14], %38 {strides = array<i32>} : memref<1x8x128xf32, #tpu.memory_space<vmem>>, vector<1x8x128xf32>,
    return
  }
  func.func @transform_0(%arg0: i32) -> (i32, i32) {
    %c0_i32 = arith.constant 0 : i32
    %c0_i32_0 = arith.constant 0 : i32
    %c0_i32_1 = arith.constant 0 : i32
    return %c0_i32, %c0_i32_0 : i32, i32
  }
  func.func @transform_1(%arg0: i32) -> (i32, i32) {
    %c0_i32 = arith.constant 0 : i32
    %c0_i32_0 = arith.constant 0 : i32
    return %arg0, %c0_i32 : i32, i32
  }
  func.func @transform_2(%arg0: i32) -> (i32, i32) {
    %c0_i32 = arith.constant 0 : i32
    %c0_i32_0 = arith.constant 0 : i32
    return %arg0, %c0_i32 : i32, i32
  }
  func.func @transform_3(%arg0: i32) -> (i32, i32, i32) {
    %c0_i32 = arith.constant 0 : i32
    %c0_i32_0 = arith.constant 0 : i32
    %c0_i32_1 = arith.constant 0 : i32
    return %arg0, %c0_i32, %c0_i32_0 : i32, i32, i32
  }
}

</mosaic_0001>

<bundles_post_ra>
// kernel: tpu_custom_call.1
= control target key start
LH: loop header
LB: loop body
LE: loop exit
PB: predicated region body
PF: predicated region fallthrough
CT: control target
= control target key end

     0   :  { %8 = vsyncpa [#allocation3], 0  ;;  %s393_s0 = inlined_call_operand.hbm [shape: f32[16,256], index: 0, kind: input, shape index: {}]   ;;  %s394_s1 = inlined_call_operand.hbm [shape: f32[8,16], index: 1, kind: input, shape index: {}]   ;;  %s395_s2 = inlined_call_operand.hbm [shape: f32[8,16], index: 2, kind: input, shape index: {}]   ;;  %s396_s3 = inlined_call_operand.hbm [shape: f32[1,8,128], index: 3, kind: output, shape index: {}]  }
   0x1   :  { %9 = vsyncpa [#allocation6], 0 }
   0x2   :  { %10 = vsyncpa [#allocation4], 0  ;;  %s311_s12 = smov [#allocation5]   ;;  %s312_s14 = smov [#allocation2]  }
   0x3   :  { %s29_s13 = sshll.u32 %s311_s12, 4  ;;  %s16_s15 = sshll.u32 %s312_s14, 4  ;;  %s30_s13 = int_to_ptr.vmem [resolvable:$true] %s29_s13  ;;  %s338_s15 = int_to_ptr.vmem [resolvable:$true] %s16_s15 }
   0x4   :  { %s217_s18 = scalar_lea.hbm %s394_s1, 128 }
   0x5   :  { %p218_p0 = scmp.ne.s32.totalorder %s394_s1, %s217_s18  ;;  %p221_p1 = scmp.lt.u32.totalorder %s217_s18, %s394_s1 }
   0x7   :  { %p223_p2 = pnand %p221_p1, %p218_p0 }
   0x9   :  { %226 = shalt.err (!%p223_p2)
}
   0xa   :  { %s227_s23 = scalar_lea.vmem %s30_s13, 128  ;;  %p232_p4 = scmp.lt.s32.totalorder %s30_s13, %s30_s13 }
   0xb   :  { %p228_p3 = scmp.ne.s32.totalorder %s30_s13, %s227_s23  ;;  %p233_p5 = scmp.lt.s32.totalorder %s227_s23, %s227_s23 }
   0xd   :  { %p234_p6 = por %p233_p5, %p232_p4 }
   0xf   :  { %p235_p7 = pnand %p234_p6, %p228_p3 }
  0x11   :  { %238 = shalt.err (!%p235_p7)
}
  0x12   :  { %32 = dma.hbm_to_vmem [thread:$0]  %s394_s1, 128, %s30_s13, [#allocation6]  }
  0x13   :  { %s239_s28 = scalar_lea.hbm %s393_s0, 512 }
  0x14   :  { %p240_p8 = scmp.ne.s32.totalorder %s393_s0, %s239_s28  ;;  %p243_p9 = scmp.lt.u32.totalorder %s239_s28, %s393_s0 }
  0x16   :  { %p245_p10 = pnand %p243_p9, %p240_p8 }
  0x18   :  { %248 = shalt.err (!%p245_p10)
}
  0x19   :  { %s249_s6 = scalar_lea.vmem %s338_s15, 512  ;;  %p254_p12 = scmp.lt.s32.totalorder %s338_s15, %s338_s15 }
  0x1a   :  { %p250_p11 = scmp.ne.s32.totalorder %s338_s15, %s249_s6  ;;  %p255_p13 = scmp.lt.s32.totalorder %s249_s6, %s249_s6 }
  0x1c   :  { %p256_p0 = por %p255_p13, %p254_p12 }
  0x1e   :  { %p257_p1 = pnand %p256_p0, %p250_p11 }
  0x20   :  { %260 = shalt.err (!%p257_p1)
}
  0x21   :  { %s313_s1 = smov 256   ;;  %s314_s7 = smov 16  }
  0x22   :  { %22 = dma.hbm_to_vmem [thread:$0]  %s393_s0, 512, %s338_s15, [#allocation3], %s313_s1, %s313_s1, %s314_s7  }
  0x23   :  { %s315_s10 = smov [#allocation7]   ;;  %s261_s14 = scalar_lea.hbm %s395_s2, 128 }
  0x24   :  { %s39_s11 = sshll.u32 %s315_s10, 4  ;;  %p262_p2 = scmp.ne.s32.totalorder %s395_s2, %s261_s14  ;;  %s40_s11 = int_to_ptr.vmem [resolvable:$true] %s39_s11 }
  0x25   :  { %p265_p3 = scmp.lt.u32.totalorder %s261_s14, %s395_s2 }
  0x27   :  { %p267_p4 = pnand %p265_p3, %p262_p2 }
  0x29   :  { %270 = shalt.err (!%p267_p4)
}
  0x2a   :  { %s271_s20 = scalar_lea.vmem %s40_s11, 128  ;;  %p276_p6 = scmp.lt.s32.totalorder %s40_s11, %s40_s11 }
  0x2b   :  { %p272_p5 = scmp.ne.s32.totalorder %s40_s11, %s271_s20  ;;  %p277_p7 = scmp.lt.s32.totalorder %s271_s20, %s271_s20 }
  0x2d   :  { %p278_p8 = por %p277_p7, %p276_p6 }
  0x2f   :  { %p279_p9 = pnand %p278_p8, %p272_p5 }
  0x31   :  { %282 = shalt.err (!%p279_p9)
}
  0x32   :  { %42 = dma.hbm_to_vmem [thread:$0]  %s395_s2, 128, %s40_s11, [#allocation6]  }
  0x33   :  { %305 = dma.done.wait [#allocation3], 512  }
  0x34   :  { %306 = vsyncadd [#allocation3], 4294966784 }
  0x35   :  { %307 = dma.done.wait [#allocation6], 256  }
  0x36   :  { %308 = vsyncadd [#allocation6], 4294967040  ;;  %v316_v0 = vmov 0.0   ;;  %v65_v1 = vld [vmem:[#allocation2 + $0x8] sm:$0xff]  ;;  %v67_v2 = vld [vmem:[#allocation2 + $0x18] sm:$0xff]  ;;  %vm68_vm0 = vcmask 130048   ;;  %v176_v36 = vlaneseq }
  0x37   :  { %136 = vmatprep.mubr.f32.mxu0 %v316_v0  ;;  %v64_v3 = vld [vmem:[#allocation2] sm:$0xff]  ;;  %v200_v4 = vpack.c.bf16 %v67_v2, %v65_v1  ;;  %v66_v5 = vld [vmem:[#allocation2 + $0x10] sm:$0xff]  ;;  %v53_v7 = vld [vmem:[#allocation7] sm:$0xff]  ;;  %vm154_vm2 = vcmask 7168   ;;  %s317_s22 = smov [#allocation8]  }
  0x38   :  { %v52_v6 = vld [vmem:[#allocation5] sm:$0xff]  ;;  %v202_v8 = vpack.c.bf16 %v66_v5, %v64_v3  ;;  %v177_v37 = vand.u32 127, %v176_v36  ;;  %s189_s23 = sshll.u32 %s317_s22, 4  ;;  %s190_s23 = int_to_ptr.vmem [resolvable:$true] %s189_s23 }
  0x39   :  { %201 = vmatprep.subr.bf16.mxu0 %v200_v4  ;;  %v60_v9 = vsub.f32 %v53_v7, %v52_v6  ;;  %s283_s25 = scalar_lea.vmem %s190_s23, 128  ;;  %p288_p11 = scmp.lt.s32.totalorder %s190_s23, %s190_s23 }
  0x3a   :  { %203 = vmatpush1.bf16.msra.mxu0 %v202_v8  ;;  %vm178_vm4 = vcmp.eq.s32.totalorder %v177_v37, 0  ;;  %p284_p10 = scmp.ne.s32.totalorder %s190_s23, %s283_s25  ;;  %p289_p12 = scmp.lt.s32.totalorder %s283_s25, %s283_s25 }
  0x3c   :  { %p290_p13 = por %p289_p12, %p288_p11 }
  0x3d   :  { %199 = vmatmul.mubr.msk.f32.vlgmr.msra.gmra.mrb[0].mxu0 %vm68_vm0, %v60_v9 }
  0x3e   :  { %p291_p0 = pnand %p290_p13, %p284_p10 }
 0x110   :  { %v138_v10 = vpop.f32.mrb[0].mxu0 }
 0x111   :  { %v140_v11 = vpop.f32.mrb[1].mxu0  ;;  %v143_v12 = vmul.f32 %v138_v10, %v138_v10 }
 0x112   :  { %v165_v13 = vand.u32 2147483647, %v140_v11 }
 0x113   :  { %144 = vadd.xlane.f32.xlu0 %v143_v12 }
 0x114   :  { %166 = vadd.xlane.f32.xlu1 %v165_v13 }
 0x1a0   :  { %v145_v14 = vpop.xlane.xlu0 %144 }
 0x1a1   :  { %v146_v15 = vmul.f32 0.0625, %v145_v14  ;;  %v167_v22 = vpop.xlane.xlu1 %166 }
 0x1a2   :  { %v168_v23 = vrot.slane %v167_v22, 4 }
 0x1a3   :  { %215 = vrsqrt.f32 %v146_v15  ;;  %vm149_vm1 = vcmp.eq.f32.partialorder %v146_v15, inf  ;;  %v152_v18 = vand.u32 2147483648, %v146_v15  ;;  %vm151_vm3 = vcmp.eq.f32.partialorder %v146_v15, 0.0 }
 0x1a4   :  { %v169_v24 = vadd.f32 %v168_v23, %v167_v22 }
 0x1a6   :  { %v170_v25 = vrot.slane %v169_v24, 2 }
 0x1a8   :  { %v171_v29 = vadd.f32 %v170_v25, %v169_v24 }
 0x1aa   :  { %v172_v32 = vrot.slane %v171_v29, 1 }
 0x1ac   :  { %v173_v35 = vadd.f32 %v172_v32, %v171_v29 }
 0x1ad   :  { %v216_v16 = vpop.eup %215 }
 0x1ae   :  { %v148_v17 = vmul.f32 %v216_v16, %v146_v15 }
 0x1b0   :  { %v150_v19 = vsel %vm149_vm1, %v146_v15, %v148_v17 }
 0x1b1   :  { %v153_v20 = vsel %vm151_vm3, %v152_v18, %v150_v19 }
 0x1b2   :  { %v155_v21 = vsel %vm154_vm2, %v153_v20, 0.0 }
 0x1b3   :  { %156 = vadd.xlane.f32.xlu0 %v155_v21 }
 0x240   :  { %v157_v26 = vpop.xlane.xlu0 %156 }
 0x241   :  { %v158_v27 = vrot.slane %v157_v26, 4 }
 0x243   :  { %v159_v28 = vadd.f32 %v158_v27, %v157_v26 }
 0x245   :  { %v160_v30 = vrot.slane %v159_v28, 2 }
 0x247   :  { %v161_v31 = vadd.f32 %v160_v30, %v159_v28 }
 0x249   :  { %v162_v33 = vrot.slane %v161_v31, 1 }
 0x24b   :  { %v163_v34 = vadd.f32 %v162_v33, %v161_v31 }
 0x24d   :  { %204 = vpush %v163_v34 }
 0x24e   :  { %206 = vpush %v173_v35 }
 0x27e   :  { %s205_s2 = spop %204 }
 0x27f   :  { %s207_s21 = spop %206  ;;  %v179_v38 = vstv %s205_s2 }
 0x280   :  { %s175_s24 = smul.f32 0.0625, %s207_s21 }
 0x282   :  { %v180_v39 = vstv %s175_s24 }
 0x283   :  { %v181_v40 = vsel %vm178_vm4, %v179_v38, %v180_v39 }
 0x284   :  { %182 = vst [vmem:[#allocation8] sm:$0xff] %v181_v40 }
 0x285   :  { %294 = shalt.err (!%p291_p0)
}
 0x286   :  { %s295_s28 = scalar_lea.hbm %s396_s3, 128 }
 0x287   :  { %p296_p1 = scmp.ne.s32.totalorder %s396_s3, %s295_s28  ;;  %p299_p2 = scmp.lt.u32.totalorder %s295_s28, %s396_s3 }
 0x289   :  { %p301_p3 = pnand %p299_p2, %p296_p1 }
 0x28b   :  { %304 = shalt.err (!%p301_p3)
}
 0x28c   :  { %192 = dma.vmem_to_hbm [thread:$0]  %s190_s23, 128, %s396_s3, [#allocation4]  }
 0x28d   :  { %309 = dma.done.wait [#allocation4], 128  }
 0x28e   :  { %310 = vsyncadd [#allocation4], 4294967168 }
 0x28f   :  { %196 = vsyncpa [#allocation3], 1 }
 0x290   :  { %197 = vsyncpa [#allocation6], 1 }
 0x291   :  { %198 = vsyncpa [#allocation4], 1 }

</bundles_post_ra>
